<compile_context>
chip_gen: v7x
topology: tpu7x:2x2x1
jax: 0.10.0
libtpu: 0.0.40
codegen_flags: <defaults>
</compile_context>

<pallas_src>
import functools
import math

import jax
import jax.numpy as jnp
import numpy as np
from jax.experimental import pallas as pl
from jax.experimental.pallas import tpu as pltpu

_INV_SQRT2 = 0.7071067811865476


def _intermediate_kernel(x_ref, w_ref, b_ref, o_ref, *, n_sub, tn_sub):
    """One (tm, D_ff) output stripe: x_tile @ W + b -> exact GELU, sub-tiled over N."""
    x = x_ref[...]                                   # (tm, D_in), bf16
    for s in range(n_sub):                           # static unroll: independent MXU pushes
        lo = s * tn_sub
        y = jnp.dot(x, w_ref[:, lo:lo + tn_sub],
                    preferred_element_type=jnp.float32)           # MXU, f32 acc
        y = y + b_ref[:, lo:lo + tn_sub]                          # f32 bias (broadcast over rows)
        y = 0.5 * y * (1.0 + jax.lax.erf(y * _INV_SQRT2))         # exact erf GELU (ACT2FN["gelu"])
        o_ref[:, lo:lo + tn_sub] = y.astype(o_ref.dtype)


def _pick_tm():
    """256 on v7x (64 MiB VMEM / TC), 512 on v5e/v6e (128 MiB)."""
    try:
        kind = jax.devices()[0].device_kind.lower()
        if "v7" in kind:
            return 256
    except Exception:
        return 256
    return 512


def electra_intermediate(hidden_states, w, b, *, tm=None,
                         compute_dtype=jnp.bfloat16):
    """hidden_states: [..., D_in]; w: [D_in, D_ff] (pre-transposed from PyTorch's
    [out, in] Linear weight); b: [D_ff]. Returns [..., D_ff] in hidden_states.dtype."""
    orig_shape = hidden_states.shape
    out_dtype = hidden_states.dtype
    d_in = orig_shape[-1]
    d_ff = w.shape[-1]

    x = hidden_states.reshape(-1, d_in)
    m = x.shape[0]

    if tm is None:
        tm = _pick_tm()
    tm = max(1, min(tm, m))

    # Pad M up to a multiple of tm (padded rows are discarded after the call).
    m_pad = ((m + tm - 1) // tm) * tm
    if m_pad != m:
        x = jnp.pad(x, ((0, m_pad - m), (0, 0)))

    # bf16 operands for the MXU; f32 bias / epilogue.
    x = x.astype(compute_dtype)
    w = w.astype(compute_dtype)
    b2 = b.reshape(1, d_ff).astype(jnp.float32)

    # Sub-tile the N axis into 128-multiple chunks for MXU/VPU overlap.
    n_sub = 1
    for cand in (4, 2):
        if d_ff % cand == 0 and (d_ff // cand) % 128 == 0:
            n_sub = cand
            break
    tn_sub = d_ff // n_sub

    grid = (m_pad // tm,)

    in_itemsize = jnp.dtype(compute_dtype).itemsize
    out_itemsize = jnp.dtype(out_dtype).itemsize
    cost = pl.CostEstimate(
        flops=2 * m_pad * d_in * d_ff,
        transcendentals=m_pad * d_ff,                              # one erf per output element
        bytes_accessed=(m_pad * d_in + d_in * d_ff) * in_itemsize  # x once + resident W once
                       + d_ff * 4                                  # bias (f32)
                       + m_pad * d_ff * out_itemsize,              # output once
    )

    kernel = functools.partial(_intermediate_kernel, n_sub=n_sub, tn_sub=tn_sub)

    out = pl.pallas_call(
        kernel,
        out_shape=jax.ShapeDtypeStruct((m_pad, d_ff), out_dtype),
        grid_spec=pltpu.PrefetchScalarGridSpec(
            num_scalar_prefetch=0,
            grid=grid,
            in_specs=[
                pl.BlockSpec((tm, d_in), lambda i: (i, 0)),     # x stripe (streams over M)
                pl.BlockSpec((d_in, d_ff), lambda i: (0, 0)),   # full W, VMEM-resident
                pl.BlockSpec((1, d_ff), lambda i: (0, 0)),      # full bias, VMEM-resident
            ],
            out_specs=pl.BlockSpec((tm, d_ff), lambda i: (i, 0)),
        ),
        compiler_params=pltpu.CompilerParams(
            dimension_semantics=("parallel",),
            vmem_limit_bytes=48 * 1024 * 1024),
        cost_estimate=cost,
    )(x, w, b2)

    if m_pad != m:
        out = out[:m]
    return out.reshape(*orig_shape[:-1], d_ff)


def _reference(hidden_states, w, b, compute_dtype=jnp.bfloat16):
    """Pure-JAX reference mirroring the kernel's numerics (bf16 matmul, f32 epilogue,
    exact erf GELU) — same math as the PyTorch forward."""
    xc = hidden_states.astype(compute_dtype)
    wc = w.astype(compute_dtype)
    y = jnp.dot(xc, wc, preferred_element_type=jnp.float32) + b.astype(jnp.float32)
    y = 0.5 * y * (1.0 + jax.lax.erf(y * _INV_SQRT2))
    return y.astype(hidden_states.dtype)


if __name__ == "__main__":
    # Small config consistent with the module: batch=2, seq=8,
    # hidden_size=32, intermediate_size=128 (4 * hidden), float32.
    B, S, D_IN, D_FF = 2, 8, 32, 128

    key = jax.random.PRNGKey(0)
    k_x, k_w, k_b = jax.random.split(key, 3)
    hidden_states = jax.random.normal(k_x, (B, S, D_IN), dtype=jnp.float32)
    scale = 1.0 / math.sqrt(D_IN)
    # nn.Linear weight stored pre-transposed to [in, out] for x @ W + b.
    w = jax.random.uniform(k_w, (D_IN, D_FF), jnp.float32, -scale, scale)
    b = jax.random.uniform(k_b, (D_FF,), jnp.float32, -scale, scale)

    out = electra_intermediate(hidden_states, w, b)
    out = jax.block_until_ready(out)

    ref = _reference(hidden_states, w, b)
    np.testing.assert_allclose(np.asarray(out), np.asarray(ref),
                               rtol=2e-3, atol=2e-3)
    print("KERNEL_OK")
</pallas_src>

<mosaic_0001>
module attributes {stable_mosaic.version = 11 : i64} {
  func.func @_intermediate_kernel(%arg0: i32, %arg1: memref<16x32xbf16, #tpu.memory_space<vmem>>, %arg2: memref<32x128xbf16, #tpu.memory_space<vmem>>, %arg3: memref<1x128xf32, #tpu.memory_space<vmem>>, %arg4: memref<16x128xf32, #tpu.memory_space<vmem>>) attributes {dimension_semantics = [#tpu.dimension_semantics<parallel>], iteration_bounds = array<i64: 1>, scalar_prefetch = 0 : i64, scratch_operands = 0 : i64, tpu.core_type = #tpu.core_type<tc>, window_params = [{transform_indices = @transform_0, window_bounds = array<i64: 16, 32>}, {pipeline_mode = #tpu.pipeline_mode<synchronous>, transform_indices = @transform_1, window_bounds = array<i64: 32, 128>}, {pipeline_mode = #tpu.pipeline_mode<synchronous>, transform_indices = @transform_2, window_bounds = array<i64: 1, 128>}, {transform_indices = @transform_3, window_bounds = array<i64: 16, 128>}]} {
    %c0 = arith.constant 0 : index
    %c0_0 = arith.constant 0 : index
    %0 = vector.load %arg1[%c0, %c0_0] : memref<16x32xbf16, #tpu.memory_space<vmem>>, vector<16x32xbf16>
    %c0_1 = arith.constant 0 : index
    %c0_2 = arith.constant 0 : index
    %1 = vector.load %arg2[%c0_1, %c0_2] : memref<32x128xbf16, #tpu.memory_space<vmem>>, vector<32x128xbf16>
    %cst = arith.constant dense<0.000000e+00> : vector<16x128xf32>
    %2 = tpu.matmul %0, %1, %cst {dimension_numbers = #tpu.dot_dimension_numbers<[1], [0], [0], [1], [0, 0, 1, 1], [], []>} : vector<16x32xbf16>, vector<32x128xbf16>, vector<16x128xf32> -> vector<16x128xf32>
    %c0_3 = arith.constant 0 : index
    %c0_4 = arith.constant 0 : index
    %3 = vector.load %arg3[%c0_3, %c0_4] : memref<1x128xf32, #tpu.memory_space<vmem>>, vector<1x128xf32>
    %4 = vector.broadcast %3 : vector<1x128xf32> to vector<16x128xf32>
    %5 = arith.addf %2, %4 : vector<16x128xf32>
    %cst_5 = arith.constant 5.000000e-01 : f32
    %6 = vector.broadcast %cst_5 : f32 to vector<16x128xf32>
    %7 = arith.mulf %6, %5 : vector<16x128xf32>
    %cst_6 = arith.constant 0.707106769 : f32
    %8 = vector.broadcast %cst_6 : f32 to vector<16x128xf32>
    %9 = arith.mulf %5, %8 : vector<16x128xf32>
    %10 = math.erf %9 : vector<16x128xf32>
    %cst_7 = arith.constant 1.000000e+00 : f32
    %11 = vector.broadcast %cst_7 : f32 to vector<16x128xf32>
    %12 = arith.addf %11, %10 : vector<16x128xf32>
    %13 = arith.mulf %7, %12 : vector<16x128xf32>
    %c0_8 = arith.constant 0 : index
    %c0_9 = arith.constant 0 : index
    %14 = vector.load %arg4[%c0_8, %c0_9] : memref<16x128xf32, #tpu.memory_space<vmem>>, vector<16x128xf32>
    tpu.vector_store %arg4[%c0_8, %c0_9], %13 {strides = array<i32>} : memref<16x128xf32, #tpu.memory_space<vmem>>, vector<16x128xf32>,
    return
  }
  func.func @transform_0(%arg0: i32) -> (i32, i32) {
    %c0_i32 = arith.constant 0 : i32
    %c0_i32_0 = arith.constant 0 : i32
    return %arg0, %c0_i32 : i32, i32
  }
  func.func @transform_1(%arg0: i32) -> (i32, i32) {
    %c0_i32 = arith.constant 0 : i32
    %c0_i32_0 = arith.constant 0 : i32
    %c0_i32_1 = arith.constant 0 : i32
    return %c0_i32, %c0_i32_0 : i32, i32
  }
  func.func @transform_2(%arg0: i32) -> (i32, i32) {
    %c0_i32 = arith.constant 0 : i32
    %c0_i32_0 = arith.constant 0 : i32
    %c0_i32_1 = arith.constant 0 : i32
    return %c0_i32, %c0_i32_0 : i32, i32
  }
  func.func @transform_3(%arg0: i32) -> (i32, i32) {
    %c0_i32 = arith.constant 0 : i32
    %c0_i32_0 = arith.constant 0 : i32
    return %arg0, %c0_i32 : i32, i32
  }
}

</mosaic_0001>

<bundles_post_ra>
// kernel: tpu_custom_call.1
= control target key start
LH: loop header
LB: loop body
LE: loop exit
PB: predicated region body
PF: predicated region fallthrough
CT: control target
= control target key end

     0   :  { %8 = vsyncpa [#allocation3], 0  ;;  %s321_s0 = inlined_call_operand.hbm [shape: bf16[16,32], index: 0, kind: input, shape index: {}]   ;;  %s322_s1 = inlined_call_operand.hbm [shape: bf16[32,128], index: 1, kind: input, shape index: {}]   ;;  %s323_s2 = inlined_call_operand.vmem [shape: f32[1,128], index: 2, kind: input, shape index: {}]   ;;  %s324_s3 = inlined_call_operand.hbm [shape: f32[16,128], index: 3, kind: output, shape index: {}]  }
   0x1   :  { %9 = vsyncpa [#allocation6], 0 }
   0x2   :  { %10 = vsyncpa [#allocation4], 0  ;;  %s253_s12 = smov [#allocation2]   ;;  %s181_s16 = scalar_lea.hbm %s321_s0, 128 }
   0x3   :  { %s16_s13 = sshll.u32 %s253_s12, 4  ;;  %p182_p0 = scmp.ne.s32.totalorder %s321_s0, %s181_s16  ;;  %s17_s13 = int_to_ptr.vmem [resolvable:$true] %s16_s13 }
   0x4   :  { %p185_p1 = scmp.lt.u32.totalorder %s181_s16, %s321_s0 }
   0x6   :  { %p187_p2 = pnand %p185_p1, %p182_p0 }
   0x8   :  { %190 = shalt.err (!%p187_p2)
}
   0x9   :  { %s191_s21 = scalar_lea.vmem %s17_s13, 128  ;;  %p196_p4 = scmp.lt.s32.totalorder %s17_s13, %s17_s13 }
   0xa   :  { %p192_p3 = scmp.ne.s32.totalorder %s17_s13, %s191_s21  ;;  %p197_p5 = scmp.lt.s32.totalorder %s191_s21, %s191_s21 }
   0xc   :  { %p198_p6 = por %p197_p5, %p196_p4 }
   0xe   :  { %p199_p7 = pnand %p198_p6, %p192_p3 }
  0x10   :  { %202 = shalt.err (!%p199_p7)
}
  0x11   :  { %s254_s22 = smov 64   ;;  %s255_s23 = smov 4  }
  0x12   :  { %22 = dma.hbm_to_vmem [thread:$0]  %s321_s0, 128, %s17_s13, [#allocation3], %s254_s22, %s254_s22, %s255_s23  }
  0x13   :  { %s256_s26 = smov [#allocation5]   ;;  %s203_s30 = scalar_lea.hbm %s322_s1, 256 }
  0x14   :  { %s28_s27 = sshll.u32 %s256_s26, 4  ;;  %p204_p8 = scmp.ne.s32.totalorder %s322_s1, %s203_s30  ;;  %s29_s27 = int_to_ptr.vmem [resolvable:$true] %s28_s27 }
  0x15   :  { %p207_p9 = scmp.lt.u32.totalorder %s203_s30, %s322_s1 }
  0x17   :  { %p209_p10 = pnand %p207_p9, %p204_p8 }
  0x19   :  { %212 = shalt.err (!%p209_p10)
}
  0x1a   :  { %s213_s8 = scalar_lea.vmem %s29_s27, 256  ;;  %p218_p12 = scmp.lt.s32.totalorder %s29_s27, %s29_s27 }
  0x1b   :  { %p214_p11 = scmp.ne.s32.totalorder %s29_s27, %s213_s8  ;;  %p219_p13 = scmp.lt.s32.totalorder %s213_s8, %s213_s8 }
  0x1d   :  { %p220_p0 = por %p219_p13, %p218_p12 }
  0x1f   :  { %p221_p1 = pnand %p220_p0, %p214_p11 }
  0x21   :  { %224 = shalt.err (!%p221_p1)
}
  0x22   :  { %34 = dma.hbm_to_vmem [thread:$0]  %s322_s1, 256, %s29_s27, [#allocation6], %s254_s22, %s254_s22, %s255_s23  }
  0x23   :  { %247 = dma.done.wait [#allocation3], 128  }
  0x24   :  { %248 = vsyncadd [#allocation3], 4294967168 }
  0x25   :  { %249 = dma.done.wait [#allocation6], 256  }
  0x26   :  { %250 = vsyncadd [#allocation6], 4294967040  ;;  %v257_v0 = vmov 0.0   ;;  %vm258_vm0 = vmmov 0   ;;  %v174_v1 = vld [vmem:[#allocation5] sm:$0xff]   ;;  %v175_v2 = vld [vmem:[#allocation5 + $0x8] sm:$0xff]  }
  0x27   :  { %157 = vmatprep.subr.bf16.mxu0 %v257_v0  ;;  %161 = vmatprep.mubr.msk.bf16.mxu0 %vm258_vm0, %v257_v0  ;;  %v176_v3 = vld [vmem:[#allocation2] sm:$0xff]   ;;  %vm74_vm1 = vcmask 261120   ;;  %s259_s1 = smov [#allocation7]  }
  0x28   :  { %158 = vmatpush3.bf16.msra.mxu0 %v174_v1  ;;  %v149_v4 = vld [vmem:[%s323_s2] ss:$0 sm:$0xff]  ;;  %s136_s12 = sshll.u32 %s259_s1, 4  ;;  %s137_s12 = int_to_ptr.vmem [resolvable:$true] %s136_s12 }
  0x29   :  { %159 = vmatprep.subr.bf16.mxu0 %v257_v0  ;;  %s225_s2 = scalar_lea.vmem %s137_s12, 256  ;;  %p230_p3 = scmp.lt.s32.totalorder %s137_s12, %s137_s12 }
  0x2a   :  { %p226_p2 = scmp.ne.s32.totalorder %s137_s12, %s225_s2  ;;  %p231_p4 = scmp.lt.s32.totalorder %s225_s2, %s225_s2 }
  0x2c   :  { %160 = vmatpush3.bf16.msra.mxu0 %v175_v2  ;;  %p232_p5 = por %p231_p4, %p230_p3 }
  0x2e   :  { %p233_p6 = pnand %p232_p5, %p226_p2 }
  0x2f   :  { %162 = vmatmul.mubr.msk.bf16.vlgmr.msra.gmra.mrb[0].mxu0 %vm74_vm1, %v176_v3 }
 0x102   :  { %v112_v5 = vpop.f32.mrb[0].mxu0 }
 0x103   :  { %v113_v6 = vadd.f32 %v149_v4, %v112_v5  ;;  %v163_v7 = vpop.f32.mrb[1].mxu0 }
 0x104   :  { %v115_v8 = vpop.f32.mrb[2].mxu0 }
 0x105   :  { %v121_v9 = vmul.f32 0.70710677, %v113_v6  ;;  %v116_v10 = vadd.f32 %v149_v4, %v115_v8  ;;  %v164_v11 = vpop.f32.mrb[3].mxu0  ;;  %v119_v14 = vmul.f32 0.5, %v113_v6 }
 0x107   :  { %177 = verf.f32 %v121_v9  ;;  %v122_v12 = vmul.f32 0.70710677, %v116_v10  ;;  %v120_v18 = vmul.f32 0.5, %v116_v10 }
 0x109   :  { %179 = verf.f32 %v122_v12 }
 0x111   :  { %v178_v13 = vpop.eup %177 }
 0x112   :  { %v125_v15 = vadd.f32 1.0, %v178_v13 }
 0x113   :  { %v180_v16 = vpop.eup %179 }
 0x114   :  { %v127_v17 = vmul.f32 %v125_v15, %v119_v14  ;;  %v126_v19 = vadd.f32 1.0, %v180_v16 }
 0x116   :  { %129 = vst [vmem:[#allocation7] sm:$0xff] %v127_v17  ;;  %v128_v20 = vmul.f32 %v126_v19, %v120_v18 }
 0x118   :  { %130 = vst [vmem:[#allocation7 + $0x8] sm:$0xff] %v128_v20 }
 0x119   :  { %236 = shalt.err (!%p233_p6)
}
 0x11a   :  { %s237_s15 = scalar_lea.hbm %s324_s3, 256 }
 0x11b   :  { %p238_p7 = scmp.ne.s32.totalorder %s324_s3, %s237_s15  ;;  %p241_p8 = scmp.lt.u32.totalorder %s237_s15, %s324_s3 }
 0x11d   :  { %p243_p9 = pnand %p241_p8, %p238_p7 }
 0x11f   :  { %246 = shalt.err (!%p243_p9)
}
 0x120   :  { %s260_s20 = smov 128   ;;  %s261_s21 = smov 8  }
 0x121   :  { %142 = dma.vmem_to_hbm [thread:$0]  %s137_s12, 256, %s324_s3, [#allocation4], %s260_s20, %s260_s20, %s261_s21  }
 0x122   :  { %251 = dma.done.wait [#allocation4], 256  }
 0x123   :  { %252 = vsyncadd [#allocation4], 4294967040 }
 0x124   :  { %146 = vsyncpa [#allocation3], 1 }
 0x125   :  { %147 = vsyncpa [#allocation6], 1 }
 0x126   :  { %148 = vsyncpa [#allocation4], 1 }

</bundles_post_ra>
